<compile_context>
chip_gen: v5e
topology: v5e:2x2
jax: 0.10.0
libtpu: 0.0.40
codegen_flags: <defaults>
</compile_context>

<pallas_src>
import jax
import jax.numpy as jnp
from jax import lax
from jax.experimental import pallas as pl
from jax.experimental.pallas import tpu as pltpu


# ----------------------------- kernel side -----------------------------------

def _apply_act(h, name, layer_idx):
    """Activation semantics matching MLP.forward."""
    if name == "sin":
        omega = 30.0 if layer_idx == 0 else 1.0   # SIREN-style first-layer omega
        return jnp.sin(omega * h)
    if name == "relu":
        return jnp.maximum(h, 0.0)
    if name == "tanh":
        return jnp.tanh(h)
    if name == "identity":
        return h
    raise ValueError(f"activation '{name}' not supported in this kernel")


def make_mlp_kernel(num_layers_total, nonlinearity):
    """Fused kernel: all linear layers + activations.

    Input tile arrives in natural [bm, dim_in] layout; the first matmul
    contracts over the feature axis so every intermediate is [features, bm]
    (batch on the 128-wide lane axis).  Output tile is [dim_out, bm]
    (lane-dense stores).
    """
    n = num_layers_total

    def kernel(*refs):
        x_ref = refs[0]                            # [bm, dim_in]   natural layout
        o_ref = refs[-1]                           # [dim_out, bm]  lane-dense
        wb = refs[1:-1]                            # (w0, b0, w1, b1, ...)

        x = x_ref[...]                             # [bm, dim_in]
        w0 = wb[0][...]                            # [units[1], dim_in]
        b0 = wb[1][...]                            # [units[1], 1]
        # Layer 0: h[f, b] = sum_k w0[f, k] * x[b, k]  (== F.linear, flipped).
        # "A @ B^T" contraction; lands the batch on the lane axis directly,
        # so no wrapper-side transpose of x is ever needed.
        h = lax.dot_general(w0, x.astype(w0.dtype),
                            dimension_numbers=(((1,), (1,)), ((), ())),
                            preferred_element_type=jnp.float32) + b0
        if n > 1:                                  # with_act = [True]*(n-1) + [False]
            h = _apply_act(h, nonlinearity, 0)

        # Remaining layers stay in [features, bm]; the last one has no act.
        for i in range(1, n):
            w = wb[2 * i][...]                     # [out_i, in_i]
            b = wb[2 * i + 1][...]                 # [out_i, 1]  broadcasts over lanes
            h = jnp.dot(w, h.astype(w.dtype),
                        preferred_element_type=jnp.float32) + b
            if i < n - 1:
                h = _apply_act(h, nonlinearity, i)

        o_ref[...] = h.astype(o_ref.dtype)         # [dim_out, bm], unmasked vst

    return kernel


# ----------------------------- wrapper / glue ---------------------------------

def segment_params(params, units):
    """JAX port of MLP.segment_params: flat vector -> (weights, biases)."""
    weights, biases = [], []
    itr = 0
    for i in range(len(units) - 1):
        n_w = units[i] * units[i + 1]
        weights.append(params[itr:itr + n_w].reshape(units[i + 1], units[i]))
        itr += n_w
        biases.append(params[itr:itr + units[i + 1]])
        itr += units[i + 1]
    assert params.shape[0] == itr
    return weights, biases


def _choose_bm(N, target_steps=4, min_bm=128, max_bm=4096):
    """Batch tile: large enough to amortize the ~0.35 us/step pipeline overhead,
    small enough to keep >= 2 "parallel" grid steps (both v7x TensorCores busy)
    whenever N allows it.  Always a multiple of 128 (lane-dense intermediates)."""
    bm = -(-N // target_steps)            # cdiv(N, target_steps)
    bm = -(-bm // 128) * 128              # round up to a multiple of 128
    return max(min_bm, min(max_bm, bm))


def mlp_forward(x, params, units, nonlinearity, bm=None, weights_dtype=jnp.float32):
    """Fused MLP forward via a single pallas_call, batch-tiled on the lane axis.

    bm: batch tile (rows per grid step); multiple of 128. Auto-derived if None.
    weights_dtype: jnp.bfloat16 halves weight DMA / uses native bf16 MXU on
    v6e/v7x, but also downcasts activations before every matmul so per-layer
    rounding compounds (and SIREN 'sin' omega=30 is sensitive) -- keep the f32
    default when bit-tight agreement with the f32 reference matters.
    """
    weights, biases = segment_params(params, units)
    N, dim_in = x.shape
    dim_out = units[-1]
    n_layers = len(weights)

    if bm is None:
        bm = _choose_bm(N)
    n_blocks = pl.cdiv(N, bm)                      # edge block handled by masking

    kernel = make_mlp_kernel(n_layers, nonlinearity)

    # Batch-tiled natural-layout input; full-block (replicated, VMEM-resident)
    # weights & biases (a few KB total).  At bm=4096 the double-buffered input
    # tile is ~4 MiB (lane-padded), comfortably inside the 16 MiB (v5e) /
    # 32 MiB (v6e/v7x) scoped-VMEM defaults.
    in_specs = [pl.BlockSpec((bm, dim_in), lambda i: (i, 0))]
    args = [x]
    for w, b in zip(weights, biases):
        w = w.astype(weights_dtype)                # [out, in] (original torch layout)
        b2 = b.astype(jnp.float32).reshape(-1, 1)  # [out, 1] broadcasts over lanes
        in_specs.append(pl.BlockSpec(w.shape, lambda i: (0, 0)))
        in_specs.append(pl.BlockSpec(b2.shape, lambda i: (0, 0)))
        args.extend([w, b2])

    # Lane-dense output: [dim_out, N], batch on lanes -> unmasked stores.
    out_spec = pl.BlockSpec((dim_out, bm), lambda i: (0, i))

    flops = 2 * N * sum(units[i] * units[i + 1] for i in range(n_layers))
    transcendentals = 0
    if nonlinearity in ("sin", "tanh"):
        transcendentals = N * sum(units[i + 1] for i in range(n_layers - 1))
    bytes_accessed = (N * dim_in * x.dtype.itemsize
                      + N * dim_out * 4
                      + sum(int(w.size) for w in weights) * jnp.dtype(weights_dtype).itemsize
                      + sum(int(b.size) for b in biases) * 4)

    out_t = pl.pallas_call(
        kernel,
        out_shape=jax.ShapeDtypeStruct((dim_out, N), jnp.float32),
        grid=(n_blocks,),
        in_specs=in_specs,
        out_specs=out_spec,
        compiler_params=pltpu.CompilerParams(dimension_semantics=("parallel",)),
        cost_estimate=pl.CostEstimate(flops=int(flops),
                                      transcendentals=int(transcendentals),
                                      bytes_accessed=int(bytes_accessed)),
    )(*args)

    # Tiny (12 B/row) flip back to the module's [N, dim_out] layout.
    return jnp.transpose(out_t)


def mlp_reference(x, params, units, nonlinearity):
    """Pure-JAX reference reproducing MLP.forward exactly."""
    weights, biases = segment_params(params, units)
    h = x
    n = len(weights)
    for i, (w, b) in enumerate(zip(weights, biases)):
        h = h @ w.T + b                            # F.linear(x, w, b)
        if i < n - 1:
            h = _apply_act(h, nonlinearity, i)
    return h


# ----------------------------- main --------------------------------------------

if __name__ == "__main__":
    # Module config (constructor args of MLP)
    dim_in, dim_out, dim_hidden, num_layers = 4, 3, 32, 2
    nonlinearity = "relu"                          # also supports 'sin', 'tanh', 'identity'

    units = [dim_in] + [dim_hidden] * num_layers + [dim_out]
    n_params = sum(units[i] * units[i + 1] + units[i + 1]
                   for i in range(num_layers + 1))

    # Deterministic synthetic inputs + params; N deliberately not a multiple of
    # 128 so the edge-block masking path is exercised, and the auto-chosen
    # bm=128 gives a 3-step parallel grid (sharded across TCs on v7x).
    key = jax.random.PRNGKey(0)
    kx, kp = jax.random.split(key)
    N = 300
    x = jax.random.normal(kx, (N, dim_in), dtype=jnp.float32)
    params = jax.random.normal(kp, (n_params,), dtype=jnp.float32) * 0.5

    out = mlp_forward(x, params, units, nonlinearity)
    out = jax.block_until_ready(out)

    ref = mlp_reference(x, params, units, nonlinearity)
    assert out.shape == (N, dim_out)
    assert jnp.allclose(out, ref, atol=1e-4, rtol=1e-4), "mismatch vs reference"

    # TODO(synk): MLP.forward(hidden=True) early-return of the penultimate
    # activation is not exposed; only the default forward path is implemented.

    print("KERNEL_OK")
</pallas_src>

<mosaic_0001>
module attributes {stable_mosaic.version = 11 : i64} {
  func.func @kernel(%arg0: i32, %arg1: memref<128x4xf32, #tpu.memory_space<vmem>>, %arg2: memref<32x4xf32, #tpu.memory_space<vmem>>, %arg3: memref<32x1xf32, #tpu.memory_space<vmem>>, %arg4: memref<32x32xf32, #tpu.memory_space<vmem>>, %arg5: memref<32x1xf32, #tpu.memory_space<vmem>>, %arg6: memref<3x32xf32, #tpu.memory_space<vmem>>, %arg7: memref<3x1xf32, #tpu.memory_space<vmem>>, %arg8: memref<3x128xf32, #tpu.memory_space<vmem>>) attributes {dimension_semantics = [#tpu.dimension_semantics<parallel>], iteration_bounds = array<i64: 3>, scalar_prefetch = 0 : i64, scratch_operands = 0 : i64, tpu.core_type = #tpu.core_type<tc>, window_params = [{transform_indices = @transform_0, window_bounds = array<i64: 128, 4>}, {pipeline_mode = #tpu.pipeline_mode<synchronous>, transform_indices = @transform_1, window_bounds = array<i64: 32, 4>}, {pipeline_mode = #tpu.pipeline_mode<synchronous>, transform_indices = @transform_2, window_bounds = array<i64: 32, 1>}, {pipeline_mode = #tpu.pipeline_mode<synchronous>, transform_indices = @transform_3, window_bounds = array<i64: 32, 32>}, {pipeline_mode = #tpu.pipeline_mode<synchronous>, transform_indices = @transform_4, window_bounds = array<i64: 32, 1>}, {pipeline_mode = #tpu.pipeline_mode<synchronous>, transform_indices = @transform_5, window_bounds = array<i64: 3, 32>}, {pipeline_mode = #tpu.pipeline_mode<synchronous>, transform_indices = @transform_6, window_bounds = array<i64: 3, 1>}, {transform_indices = @transform_7, window_bounds = array<i64: 3, 128>}]} {
    %c0 = arith.constant 0 : index
    %c0_0 = arith.constant 0 : index
    %0 = vector.load %arg1[%c0, %c0_0] : memref<128x4xf32, #tpu.memory_space<vmem>>, vector<128x4xf32>
    %c0_1 = arith.constant 0 : index
    %c0_2 = arith.constant 0 : index
    %1 = vector.load %arg2[%c0_1, %c0_2] : memref<32x4xf32, #tpu.memory_space<vmem>>, vector<32x4xf32>
    %c0_3 = arith.constant 0 : index
    %c0_4 = arith.constant 0 : index
    %2 = vector.load %arg3[%c0_3, %c0_4] : memref<32x1xf32, #tpu.memory_space<vmem>>, vector<32x1xf32>
    %cst = arith.constant dense<0.000000e+00> : vector<32x128xf32>
    %3 = tpu.matmul %1, %0, %cst {dimension_numbers = #tpu.dot_dimension_numbers<[1], [1], [0], [0], [0, 0, 1, 0], [], []>} : vector<32x4xf32>, vector<128x4xf32>, vector<32x128xf32> -> vector<32x128xf32>
    %4 = vector.broadcast %2 : vector<32x1xf32> to vector<32x128xf32>
    %5 = arith.addf %3, %4 : vector<32x128xf32>
    %cst_5 = arith.constant 0.000000e+00 : f32
    %6 = vector.broadcast %cst_5 : f32 to vector<32x128xf32>
    %7 = arith.maximumf %5, %6 : vector<32x128xf32>
    %c0_6 = arith.constant 0 : index
    %c0_7 = arith.constant 0 : index
    %8 = vector.load %arg4[%c0_6, %c0_7] : memref<32x32xf32, #tpu.memory_space<vmem>>, vector<32x32xf32>
    %c0_8 = arith.constant 0 : index
    %c0_9 = arith.constant 0 : index
    %9 = vector.load %arg5[%c0_8, %c0_9] : memref<32x1xf32, #tpu.memory_space<vmem>>, vector<32x1xf32>
    %cst_10 = arith.constant dense<0.000000e+00> : vector<32x128xf32>
    %10 = tpu.matmul %8, %7, %cst_10 {dimension_numbers = #tpu.dot_dimension_numbers<[1], [0], [0], [1], [0, 0, 1, 1], [], []>} : vector<32x32xf32>, vector<32x128xf32>, vector<32x128xf32> -> vector<32x128xf32>
    %11 = vector.broadcast %9 : vector<32x1xf32> to vector<32x128xf32>
    %12 = arith.addf %10, %11 : vector<32x128xf32>
    %cst_11 = arith.constant 0.000000e+00 : f32
    %13 = vector.broadcast %cst_11 : f32 to vector<32x128xf32>
    %14 = arith.maximumf %12, %13 : vector<32x128xf32>
    %c0_12 = arith.constant 0 : index
    %c0_13 = arith.constant 0 : index
    %15 = vector.load %arg6[%c0_12, %c0_13] : memref<3x32xf32, #tpu.memory_space<vmem>>, vector<3x32xf32>
    %c0_14 = arith.constant 0 : index
    %c0_15 = arith.constant 0 : index
    %16 = vector.load %arg7[%c0_14, %c0_15] : memref<3x1xf32, #tpu.memory_space<vmem>>, vector<3x1xf32>
    %cst_16 = arith.constant dense<0.000000e+00> : vector<3x128xf32>
    %17 = tpu.matmul %15, %14, %cst_16 {dimension_numbers = #tpu.dot_dimension_numbers<[1], [0], [0], [1], [0, 0, 1, 1], [], []>} : vector<3x32xf32>, vector<32x128xf32>, vector<3x128xf32> -> vector<3x128xf32>
    %18 = vector.broadcast %16 : vector<3x1xf32> to vector<3x128xf32>
    %19 = arith.addf %17, %18 : vector<3x128xf32>
    %c0_17 = arith.constant 0 : index
    %c0_18 = arith.constant 0 : index
    %20 = vector.load %arg8[%c0_17, %c0_18] : memref<3x128xf32, #tpu.memory_space<vmem>>, vector<3x128xf32>
    tpu.vector_store %arg8[%c0_17, %c0_18], %19 {strides = array<i32>} : memref<3x128xf32, #tpu.memory_space<vmem>>, vector<3x128xf32>,
    return
  }
  func.func @transform_0(%arg0: i32) -> (i32, i32) {
    %c0_i32 = arith.constant 0 : i32
    %c0_i32_0 = arith.constant 0 : i32
    return %arg0, %c0_i32 : i32, i32
  }
  func.func @transform_1(%arg0: i32) -> (i32, i32) {
    %c0_i32 = arith.constant 0 : i32
    %c0_i32_0 = arith.constant 0 : i32
    %c0_i32_1 = arith.constant 0 : i32
    return %c0_i32, %c0_i32_0 : i32, i32
  }
  func.func @transform_2(%arg0: i32) -> (i32, i32) {
    %c0_i32 = arith.constant 0 : i32
    %c0_i32_0 = arith.constant 0 : i32
    %c0_i32_1 = arith.constant 0 : i32
    return %c0_i32, %c0_i32_0 : i32, i32
  }
  func.func @transform_3(%arg0: i32) -> (i32, i32) {
    %c0_i32 = arith.constant 0 : i32
    %c0_i32_0 = arith.constant 0 : i32
    %c0_i32_1 = arith.constant 0 : i32
    return %c0_i32, %c0_i32_0 : i32, i32
  }
  func.func @transform_4(%arg0: i32) -> (i32, i32) {
    %c0_i32 = arith.constant 0 : i32
    %c0_i32_0 = arith.constant 0 : i32
    %c0_i32_1 = arith.constant 0 : i32
    return %c0_i32, %c0_i32_0 : i32, i32
  }
  func.func @transform_5(%arg0: i32) -> (i32, i32) {
    %c0_i32 = arith.constant 0 : i32
    %c0_i32_0 = arith.constant 0 : i32
    %c0_i32_1 = arith.constant 0 : i32
    return %c0_i32, %c0_i32_0 : i32, i32
  }
  func.func @transform_6(%arg0: i32) -> (i32, i32) {
    %c0_i32 = arith.constant 0 : i32
    %c0_i32_0 = arith.constant 0 : i32
    %c0_i32_1 = arith.constant 0 : i32
    return %c0_i32, %c0_i32_0 : i32, i32
  }
  func.func @transform_7(%arg0: i32) -> (i32, i32) {
    %c0_i32 = arith.constant 0 : i32
    %c0_i32_0 = arith.constant 0 : i32
    return %c0_i32, %arg0 : i32, i32
  }
}

</mosaic_0001>

<bundles_post_ra>
// kernel: tpu_custom_call.1
= control target key start
LH: loop header
LB: loop body
LE: loop exit
PB: predicated region body
PF: predicated region fallthrough
CT: control target
= control target key end

     0   :  { %12 = vsyncpa [#allocation3], 0  ;;  %s1014_s0 = inlined_call_operand.vmem [shape: f32[300,4], index: 0, kind: input, shape index: {}]   ;;  %s1015_s1 = inlined_call_operand.vmem [shape: f32[32,4], index: 1, kind: input, shape index: {}]   ;;  %s1016_s2 = inlined_call_operand.vmem [shape: f32[32,1], index: 2, kind: input, shape index: {}]   ;;  %s1017_s3 = inlined_call_operand.vmem [shape: f32[32,32], index: 3, kind: input, shape index: {}]   ;;  %s1018_s4 = inlined_call_operand.vmem [shape: f32[32,1], index: 4, kind: input, shape index: {}]   ;;  %s1019_s5 = inlined_call_operand.vmem [shape: f32[3,32], index: 5, kind: input, shape index: {}]   ;;  %s1020_s6 = inlined_call_operand.vmem [shape: f32[3,1], index: 6, kind: input, shape index: {}]   ;;  %s1021_s7 = inlined_call_operand.hbm [shape: f32[3,300], index: 7, kind: output, shape index: {}]  }
   0x1   :  { %14 = vsyncpa [#allocation3 + $0x1], 0  ;;  %s817_s24 = smov 0   ;;  %s819_s25 = smov 0  }
   0x2   :  { %s821_s26 = smov 0   ;;  %s823_s27 = smov 0  }
   0x3 LB: > { %s838_s28 = sadd.s32 4294967295, %s774_s27   ;;  %s617_s29 = sadd.s32 4294967294, %s774_s27   ;;  %s774_s27 = sphi %s823_s27, %s1027_s27   ;;  %s770_s26 = sphi %s821_s26, %s1026_s26   ;;  %s766_s25 = sphi %s819_s25, %s1025_s25   ;;  %s762_s24 = sphi %s817_s24, %s1024_s24  }
   0x4   : > { %s842_s30 = sadd.s32 1, %s774_s27   ;;  %s179_s8 = sadd.s32 1, %s770_s26 }
   0x5   : > { %s176_s9 = ssub.s32 %s774_s27, %s842_s30  ;;  %p189_p0 = scmp.ne.s32.totalorder %s770_s26, %s766_s25 }
   0x6   : > { %p177_p1 = scmp.eq.s32.totalorder %s176_s9, 0  ;;  %p190_p2 = scmp.eq.s32.totalorder %s838_s28, 2 }
   0x7   : > { %p195_p3 = scmp.ne.s32.totalorder %s766_s25, %s762_s24  ;;  %p196_p4 = scmp.eq.s32.totalorder %s617_s29, 2 }
   0x8   : > { %s853_s10 = scalar_select %p177_p1, %s770_s26, %s179_s8  }
   0x9   : > { %p855_p5 = por %p190_p2, %p189_p0  ;;  %p859_p6 = por %p196_p4, %p195_p3 }
   0xa   : > { %p620_p7 = scmp.ge.s32.totalorder %s774_s27, 1  ;;  %p249_p8 = scmp.lt.s32.totalorder %s774_s27, 4 }
   0xc   : > { %p250_p9 = pnand %p620_p7, %p249_p8 }
   0xd   : > { %s622_s13 = sshll.u32 (!%p250_p9), %s838_s28, 4  ;;  %s282_s9 = sand.u32 (!%p250_p9), 1, %s766_s25  }
   0xe   : > { %253 = sbr.rel (%p250_p9) target bundleno = 543 (0x21f), region = 48  ;;  %p290_p10 = scmp.lt.s32.totalorder (!%p250_p9), %s622_s13, 37 }
   0xf   : > { %s732_s8 = scalar_lea.hbm (!%p250_p9), %s1021_s7, 12 }
  0x13   : > { %s1029_s13 = smov (!%p290_p10, %s622_s13), 37  ;;  %vm343_vm0 = vcmask 31744   ;;  %v322_v11 = vld [vmem:[%s1016_s2 + $0x18] sm:$0xff]  ;;  %v320_v12 = vld [vmem:[%s1016_s2 + $0x8] sm:$0xff]  ;;  %v776_v14 = vmov 0   ;;  %v321_v16 = vld [vmem:[%s1016_s2 + $0x10] sm:$0xff] }
  0x14   : > { %s623_s14 = sshll.u32 %s1029_s13, 3  ;;  %709 = vset.pattern.permute.xlu0 %v776_v14  ;;  %710 = vset.pattern.permute.xlu1 %v776_v14  ;;  %v319_v17 = vld [vmem:[%s1016_s2] sm:$0xff]  ;;  %v442_v20 = vld [vmem:[%s1018_s4 + $0x8] sm:$0xff]  ;;  %v317_v25 = vld [vmem:[%s1015_s1 + $0x10] sm:$0xff]  ;;  %vm465_vm1 = vcmask 261120   ;;  %s621_s13 = sshll.u32 %s282_s9, 2 }
  0x15   : > { %s869_s17 = scalar_lea.vmem %s1014_s0, %s623_s14  ;;  %340 = vperm.xlu0 %709, %v322_v11   ;;  %330 = vperm.xlu1 %710, %v320_v12   ;;  %v441_v21 = vld [vmem:[%s1018_s4] sm:$0xff]  ;;  %v316_v23 = vld [vmem:[%s1015_s1 + $0x8] sm:$0xff]  ;;  %v318_v26 = vld [vmem:[%s1015_s1 + $0x18] sm:$0xff]  ;;  %s650_s14 = sshll.u32 %s838_s28, 2 }
  0x16   : > { %v314_v0 = vld [vmem:[%s869_s17 + $0x78] sm:$0xff]  ;;  %v313_v1 = vld [vmem:[%s869_s17 + $0x70] sm:$0xff]  ;;  %v312_v2 = vld [vmem:[%s869_s17 + $0x68] sm:$0xff]  ;;  %711 = vset.pattern.permute.xlu2 %v776_v14  ;;  %s553_s18 = scalar_lea.hbm %s1021_s7, %s650_s14  ;;  %s284_s19 = scalar_lea.vmem [#allocation2], %s621_s13 }
  0x17   : > { %653 = vmatpush.xpose.msk.msra.mxu3 %vm343_vm0, %v314_v0  ;;  %624 = vmatpush.xpose.msk.msra.mxu0 %vm343_vm0, %v314_v0  ;;  %v311_v3 = vld [vmem:[%s869_s17 + $0x60] sm:$0xff]  ;;  %v310_v4 = vld [vmem:[%s869_s17 + $0x58] sm:$0xff]  ;;  %v309_v5 = vld [vmem:[%s869_s17 + $0x50] sm:$0xff]  ;;  %s555_s20 = sshll.u32 %s284_s19, 4  ;;  %s557_s21 = sshll.u32 %s553_s18, 4  ;;  %s556_s20 = int_to_ptr.vmem [resolvable:$true] %s555_s20  ;;  %s558_s21 = int_to_ptr.hbm [resolvable:$true] %s557_s21 }
  0x18   : > { %v308_v6 = vld [vmem:[%s869_s17 + $0x48] sm:$0xff]  ;;  %v307_v7 = vld [vmem:[%s869_s17 + $0x40] sm:$0xff]  ;;  %v306_v8 = vld [vmem:[%s869_s17 + $0x38] sm:$0xff]  ;;  %s726_s22 = sshra.s32 %s558_s21, 4  ;;  %s727_s22 = int_to_ptr.hbm [resolvable:$true] %s726_s22 }
  0x19   : > { %v305_v9 = vld [vmem:[%s869_s17 + $0x30] sm:$0xff]  ;;  %v304_v10 = vld [vmem:[%s869_s17 + $0x28] sm:$0xff]  ;;  %v303_v13 = vld [vmem:[%s869_s17 + $0x20] sm:$0xff]  ;;  %s728_s23 = scalar_lea.hbm %s727_s22, 4  ;;  %p733_p0 = scmp.lt.s32.totalorder %s727_s22, %s1021_s7 }
  0x1a   : > { %v302_v15 = vld [vmem:[%s869_s17 + $0x18] sm:$0xff]  ;;  %v301_v18 = vld [vmem:[%s869_s17 + $0x10] sm:$0xff]  ;;  %v300_v19 = vld [vmem:[%s869_s17 + $0x8] sm:$0xff]  ;;  %p729_p11 = scmp.ne.s32.totalorder %s727_s22, %s728_s23  ;;  %p734_p1 = scmp.lt.s32.totalorder %s732_s8, %s728_s23 }
  0x1b   : > { %654 = vmatpush.xpose.msk.msra.mxu3 %vm343_vm0, %v313_v1  ;;  %625 = vmatpush.xpose.msk.msra.mxu0 %vm343_vm0, %v313_v1  ;;  %v299_v22 = vld [vmem:[%s869_s17] sm:$0xff]  ;;  %v444_v39 = vld [vmem:[%s1018_s4 + $0x18] sm:$0xff]  ;;  %v443_v45 = vld [vmem:[%s1018_s4 + $0x10] sm:$0xff]  ;;  %s543_s17 = scalar_lea.sflag [#allocation3], %s282_s9 }
  0x1c   : > { %v315_v24 = vld [vmem:[%s1015_s1] sm:$0xff]  ;;  %462 = vperm.xlu2 %711, %v444_v39   ;;  %v438_v46 = vld [vmem:[%s1017_s3 + $0x8] sm:$0xff]  ;;  %v439_v48 = vld [vmem:[%s1017_s3 + $0x10] sm:$0xff]  ;;  %p730_p12 = pnand %p729_p11, %p855_p5  ;;  %p735_p2 = por %p734_p1, %p733_p0 }
  0x1d   : > { %335 = vperm.xlu0 %709, %v321_v16   ;;  %325 = vperm.xlu1 %710, %v319_v17   ;;  %v437_v44 = vld [vmem:[%s1017_s3] sm:$0xff]  ;;  %v440_v49 = vld [vmem:[%s1017_s3 + $0x18] sm:$0xff] }
  0x1e   : > { %v512_v47 = vld [vmem:[%s1020_s6] sm:$0x7]  ;;  %p731_p13 = pneg %p730_p12 }
  0x1f   : > { %655 = vmatpush.xpose.msk.msra.mxu3 %vm343_vm0, %v312_v2  ;;  %626 = vmatpush.xpose.msk.msra.mxu0 %vm343_vm0, %v312_v2  ;;  %v511_v2 = vld [vmem:[%s1019_s5] sm:$0x7] }
  0x20   : > { %p736_p3 = pnand %p735_p2, %p731_p13 }
  0x23   : > { %656 = vmatpush.xpose.msk.msra.mxu3 %vm343_vm0, %v311_v3  ;;  %627 = vmatpush.xpose.msk.msra.mxu0 %vm343_vm0, %v311_v3 }
  0x24   : > { %457 = vperm.xlu2 %711, %v443_v45  }
  0x25   : > { %452 = vperm.xlu0 %709, %v442_v20   ;;  %447 = vperm.xlu1 %710, %v441_v21  }
  0x27   : > { %657 = vmatpush.xpose.msk.msra.mxu3 %vm343_vm0, %v310_v4  ;;  %628 = vmatpush.xpose.msk.msra.mxu0 %vm343_vm0, %v310_v4 }
  0x2b   : > { %658 = vmatpush.xpose.msk.msra.mxu3 %vm343_vm0, %v309_v5  ;;  %629 = vmatpush.xpose.msk.msra.mxu0 %vm343_vm0, %v309_v5 }
  0x2c   : > { %515 = vperm.xlu2 %711, %v512_v47  }
  0x2f   : > { %659 = vmatpush.xpose.msk.msra.mxu3 %vm343_vm0, %v308_v6  ;;  %630 = vmatpush.xpose.msk.msra.mxu0 %vm343_vm0, %v308_v6 }
  0x33   : > { %660 = vmatpush.xpose.msk.msra.mxu3 %vm343_vm0, %v307_v7  ;;  %631 = vmatpush.xpose.msk.msra.mxu0 %vm343_vm0, %v307_v7 }
  0x37   : > { %661 = vmatpush.xpose.msk.msra.mxu3 %vm343_vm0, %v306_v8  ;;  %632 = vmatpush.xpose.msk.msra.mxu0 %vm343_vm0, %v306_v8 }
  0x3b   : > { %662 = vmatpush.xpose.msk.msra.mxu3 %vm343_vm0, %v305_v9  ;;  %633 = vmatpush.xpose.msk.msra.mxu0 %vm343_vm0, %v305_v9 }
  0x3f   : > { %663 = vmatpush.xpose.msk.msra.mxu3 %vm343_vm0, %v304_v10  ;;  %634 = vmatpush.xpose.msk.msra.mxu0 %vm343_vm0, %v304_v10 }
  0x43   : > { %664 = vmatpush.xpose.msk.msra.mxu3 %vm343_vm0, %v303_v13  ;;  %635 = vmatpush.xpose.msk.msra.mxu0 %vm343_vm0, %v303_v13 }
  0x47   : > { %665 = vmatpush.xpose.msk.msra.mxu3 %vm343_vm0, %v302_v15  ;;  %636 = vmatpush.xpose.msk.msra.mxu0 %vm343_vm0, %v302_v15 }
  0x4b   : > { %666 = vmatpush.xpose.msk.msra.mxu3 %vm343_vm0, %v301_v18  ;;  %637 = vmatpush.xpose.msk.msra.mxu0 %vm343_vm0, %v301_v18 }
  0x4f   : > { %667 = vmatpush.xpose.msk.msra.mxu3 %vm343_vm0, %v300_v19  ;;  %638 = vmatpush.xpose.msk.msra.mxu0 %vm343_vm0, %v300_v19 }
  0x53   : > { %668 = vmatpush.xpose.msk.msra.mxu3 %vm343_vm0, %v299_v22  ;;  %639 = vmatpush.xpose.msk.msra.mxu0 %vm343_vm0, %v299_v22 }
  0x56   : > { %641 = vmatmul.msk.f32.vlgmr.msra.gmra.mxu3 %vm343_vm0, %v316_v23  ;;  %640 = vmatmul.msk.f32.vlgmr.msra.gmra.mxu0 %vm343_vm0, %v315_v24 }
  0x5e   : > { %642 = vmatmul.msk.f32.gmra.mxu3 %vm343_vm0, %v317_v25 }
  0x66   : > { %643 = vmatmul.msk.f32.gmra.mxu3 %vm343_vm0, %v318_v26 }
  0x76   : > { %v463_v52 = vpop.permute.xlu2 %462 }
  0x7e   : > { %v458_v54 = vpop.permute.xlu2 %457 }
  0x86   : > { %v516_v3 = vpop.permute.xlu2 %515 }
  0x87   : > { %v341_v28 = vpop.permute.xlu0 %340  ;;  %v331_v30 = vpop.permute.xlu1 %330 }
  0x8f   : > { %v336_v31 = vpop.permute.xlu0 %335  ;;  %v326_v38 = vpop.permute.xlu1 %325 }
  0x97   : > { %v453_v58 = vpop.permute.xlu0 %452  ;;  %v448_v61 = vpop.permute.xlu1 %447 }
  0xd3   : > { %v421_v35 = vpop.f32.mrf.mxu0 }
  0xd4   : > { %v422_v41 = vadd.f32 %v421_v35, %v326_v38 }
  0xd6   : > { %v433_v43 = vmax.f32 %v422_v41, 0.0 }
  0xd9   : > { %v424_v27 = vpop.f32.mrf.mxu3 }
  0xda   : > { %v425_v36 = vadd.f32 %v424_v27, %v331_v30 }
  0xdc   : > { %v434_v42 = vmax.f32 %v425_v36, 0.0 }
  0xe1   : > { %v427_v29 = vpop.f32.mrf.mxu3 }
  0xe2   : > { %v428_v33 = vadd.f32 %v427_v29, %v336_v31 }
  0xe4   : > { %v435_v40 = vmax.f32 %v428_v33, 0.0 }
  0xe9   : > { %v430_v32 = vpop.f32.mrf.mxu3 }
  0xea   : > { %v431_v34 = vadd.f32 %v430_v32, %v341_v28 }
  0xec   : > { %v436_v37 = vmax.f32 %v431_v34, 0.0 }
  0xee   : > { %490 = vmatpush.msra.mxu1 %v436_v37 }
  0xf0   : > { %491 = vmatpush.msra.mxu1 %v435_v40 }
  0xf2   : > { %492 = vmatpush.msra.mxu1 %v434_v42 }
  0xf4   : > { %493 = vmatpush.msra.mxu1 %v433_v43 }
  0xf5   : > { %644 = vmatmul.msk.f32.vlgmr.msra.gmra.mxu1 %vm465_vm1, %v437_v44 }
  0xfd   : > { %645 = vmatmul.msk.f32.gmra.mxu1 %vm465_vm1, %v438_v46 }
 0x105   : > { %646 = vmatmul.msk.f32.gmra.mxu1 %vm465_vm1, %v439_v48 }
 0x10d   : > { %647 = vmatmul.msk.f32.gmra.mxu1 %vm465_vm1, %v440_v49 }
 0x172   : > { %v495_v50 = vpop.f32.mrf.mxu1 }
 0x173   : > { %v496_v62 = vadd.f32 %v495_v50, %v448_v61 }
 0x175   : > { %v507_v1 = vmax.f32 %v496_v62, 0.0 }
 0x17a   : > { %v498_v51 = vpop.f32.mrf.mxu1 }
 0x17b   : > { %v499_v59 = vadd.f32 %v498_v51, %v453_v58 }
 0x17d   : > { %v508_v0 = vmax.f32 %v499_v59, 0.0 }
 0x182   : > { %v501_v53 = vpop.f32.mrf.mxu1 }
 0x183   : > { %v502_v56 = vadd.f32 %v501_v53, %v458_v54 }
 0x185   : > { %v509_v63 = vmax.f32 %v502_v56, 0.0 }
 0x18a   : > { %v504_v55 = vpop.f32.mrf.mxu1 }
 0x18b   : > { %v505_v57 = vadd.f32 %v504_v55, %v463_v52 }
 0x18d   : > { %v510_v60 = vmax.f32 %v505_v57, 0.0 }
 0x18f   : > { %533 = vmatpush.msra.mxu2 %v510_v60 }
 0x191   : > { %534 = vmatpush.msra.mxu2 %v509_v63 }
 0x193   : > { %535 = vmatpush.msra.mxu2 %v508_v0 }
 0x195   : > { %536 = vmatpush.msra.mxu2 %v507_v1 }
 0x196   : > { %648 = vmatmul.msk.f32.vlgmr.msra.gmra.mxu2 %vm465_vm1, %v511_v2 }
 0x219   : > { %v538_v4 = vpop.f32.mrf.mxu2 }
 0x21a   : > { %v539_v5 = vadd.f32 %v538_v4, %v516_v3 }
 0x21c   : > { %541 = vst [vmem:[%s284_s19] sm:$0x7] %v539_v5 }
 0x21d   : > { %739 = shalt.err (!%p736_p3)
}
 0x21e   : > { %669 = dma.vmem_to_hbm [thread:$0]  (%p855_p5), %s556_s20, 64, %s558_s21, %s543_s17  }
 0x21f PF: > { %p675_p4 = scmp.ge.s32.totalorder %s774_s27, 2  ;;  %s569_s9 = sand.u32 1, %s762_s24  }
 0x220   : > { %s570_s15 = scalar_lea.sflag [#allocation3], %s569_s9 }
 0x221   : > { %p672_p7 = pnand %p675_p4, %p859_p6 }
 0x223   : > { %p673_p8 = pneg %p672_p7 }
 0x225   : > { %757 = dma.done.wait (%p673_p8), %s570_s15, 64  }
 0x226   : > { %759 = vsyncadd (%p673_p8), %s570_s15, 4294967232  ;;  %p17_p9 = scmp.ge.s32.totalorder %s842_s30, 5   ;;  %s1024_s24 = smov %s766_s25 }
 0x227   : > { %s1025_s25 = smov %s770_s26  ;;  %s1026_s26 = smov %s853_s10 }
 0x228   : > { %s1027_s27 = smov %s842_s30  ;;  %19 = sbr.rel (!%p17_p9) target bundleno = 3 (0x3), region = 83 }
 0x22d   :  { %576 = vsyncpa [#allocation3], 1 }
 0x22e   :  { %578 = vsyncpa [#allocation3 + $0x1], 1 }

</bundles_post_ra>
